<compile_context>
chip_gen: v7x
topology: tpu7x:2x2x1
jax: 0.10.0
libtpu: 0.0.40
codegen_flags: <defaults>
</compile_context>

<pallas_src>
import jax
import jax.numpy as jnp
from jax.experimental import pallas as pl
from jax.experimental.pallas import tpu as pltpu

D_PAD = 128          # lane-dense padded width for hidden layers / outputs
NUM_LAYERS = 4       # Linear, Linear, Linear, Linear (ReLU after first three)


def _round_up(n, m):
    return (n + m - 1) // m * m


def make_dqn_kernel(obs_k, n_chunks):
    """Build the fused 4-layer MLP kernel for one batch tile.

    obs_k:    real observation width rounded up to 8 (K of the first matmul)
    n_chunks: number of independent row-chunks the tile is split into
              (2 -> two independent matmul chains in flight, hides MXU drain).
    """

    def kernel(x_ref, w_ref, b_ref, out_ref):
        # x_ref:   (TILE_B, obs_k)        f32
        # w_ref:   (4, 128, 128)          f32 or bf16, zero-padded, (in,out)
        # b_ref:   (4, 1, 128)            f32, zero-padded
        # out_ref: (TILE_B, 128)          f32 lane-dense; [:, :n_actions] valid
        tile = x_ref.shape[0]
        rows = tile // n_chunks
        wdt = w_ref.dtype

        for c in range(n_chunks):                      # static unroll
            lo, hi = c * rows, (c + 1) * rows
            h = x_ref[lo:hi, :].astype(wdt)

            # Layer 0: contract only over the real obs width (K = obs_k),
            # static sublane-aligned slice of the resident weight slab.
            acc = jnp.dot(h, w_ref[0, :obs_k, :],
                          preferred_element_type=jnp.float32)
            h = jnp.maximum(acc + b_ref[0], 0.0)       # f32 bias + ReLU

            for layer in range(1, NUM_LAYERS):
                acc = jnp.dot(h.astype(wdt), w_ref[layer],
                              preferred_element_type=jnp.float32)
                acc = acc + b_ref[layer]
                h = jnp.maximum(acc, 0.0) if layer < NUM_LAYERS - 1 else acc

            out_ref[lo:hi, :] = h.astype(out_ref.dtype)

    return kernel


def init_dqn_params(key, obs_size, n_actions, hidden_size=16):
    """PyTorch-Linear-style init U(-1/sqrt(in), 1/sqrt(in)); weights stored (in, out)."""
    dims = [(obs_size, hidden_size),
            (hidden_size, hidden_size),
            (hidden_size, hidden_size),
            (hidden_size, n_actions)]
    params = {}
    for i, (fan_in, fan_out) in enumerate(dims, start=1):
        key, kw, kb = jax.random.split(key, 3)
        bound = 1.0 / (fan_in ** 0.5)
        params[f"w{i}"] = jax.random.uniform(
            kw, (fan_in, fan_out), jnp.float32, minval=-bound, maxval=bound)
        params[f"b{i}"] = jax.random.uniform(
            kb, (1, fan_out), jnp.float32, minval=-bound, maxval=bound)
    return params


def pack_dqn_params(params, weight_dtype=jnp.bfloat16):
    """Pack per-layer (in,out)/(1,out) params into zero-padded resident slabs.

    bf16 is the default weight dtype (full-rate MXU everywhere, half the DMA
    bytes); pass jnp.float32 for bit-accuracy testing.
    """
    w_slab = jnp.zeros((NUM_LAYERS, D_PAD, D_PAD), weight_dtype)
    b_slab = jnp.zeros((NUM_LAYERS, 1, D_PAD), jnp.float32)
    for i in range(NUM_LAYERS):
        w = params[f"w{i + 1}"].astype(weight_dtype)
        b = params[f"b{i + 1}"].astype(jnp.float32)
        w_slab = w_slab.at[i, :w.shape[0], :w.shape[1]].set(w)
        b_slab = b_slab.at[i, :, :b.shape[1]].set(b)
    return w_slab, b_slab


def dqn_forward(x, w_slab, b_slab, n_actions, tile_b=512):
    """Fused DQN MLP forward via pallas_call.

    x: (B, obs_size); cast to float32 like the PyTorch x.float().
    Returns (B, n_actions) float32.
    """
    x = x.astype(jnp.float32)
    B, obs = x.shape
    obs_k = _round_up(obs, 8)                 # K of layer 0, sublane-aligned

    # --- batch tiling -------------------------------------------------------
    if B <= 8:
        # Single full-array block (block dims equal to array dims are always
        # legal); no batch padding, single grid step.
        tile = B
        b_pad = B
    else:
        # Multiple of 8 sublanes, and capped so there are >= 2 grid steps
        # (shards across both TensorCores on v7x via "parallel" semantics).
        tile = max(8, min(_round_up(tile_b, 8),
                          _round_up(pl.cdiv(B, 2), 8)))
        b_pad = _round_up(B, tile)

    # Only pad what's actually needed (batch remainder rows, obs -> obs_k).
    if (b_pad, obs_k) != (B, obs):
        x = jnp.pad(x, ((0, b_pad - B), (0, obs_k - obs)))

    # Split the tile into two independent chains when it's big enough
    # (hides MXU result-FIFO drain between layers on v5e/v6e).
    n_chunks = 2 if (tile >= 16 and tile % 16 == 0) else 1

    grid = (b_pad // tile,)

    flops = 2 * b_pad * (obs_k + 3 * D_PAD) * D_PAD
    bytes_accessed = (b_pad * obs_k * 4
                      + int(w_slab.size) * w_slab.dtype.itemsize
                      + int(b_slab.size) * 4
                      + b_pad * D_PAD * 4)

    out = pl.pallas_call(
        make_dqn_kernel(obs_k, n_chunks),
        grid=grid,
        in_specs=[
            pl.BlockSpec((tile, obs_k), lambda i: (i, 0)),                 # x tile
            pl.BlockSpec((NUM_LAYERS, D_PAD, D_PAD), lambda i: (0, 0, 0)),  # resident W
            pl.BlockSpec((NUM_LAYERS, 1, D_PAD), lambda i: (0, 0, 0)),      # resident b
        ],
        out_specs=pl.BlockSpec((tile, D_PAD), lambda i: (i, 0)),
        out_shape=jax.ShapeDtypeStruct((b_pad, D_PAD), jnp.float32),
        compiler_params=pltpu.CompilerParams(
            dimension_semantics=("parallel",)),
        cost_estimate=pl.CostEstimate(
            flops=flops, transcendentals=0, bytes_accessed=bytes_accessed),
    )(x, w_slab, b_slab)

    return out[:B, :n_actions]


def dqn_forward_ref(x, params):
    """Plain-JAX f32 reference (matches the PyTorch module exactly)."""
    h = x.astype(jnp.float32)
    for i in range(1, 4):
        h = jnp.maximum(h @ params[f"w{i}"] + params[f"b{i}"], 0.0)
    return h @ params["w4"] + params["b4"]


if __name__ == "__main__":
    key = jax.random.PRNGKey(0)

    batch = 2
    obs_size = 8
    n_actions = 4
    hidden_size = 16

    kx, kp, kx2 = jax.random.split(key, 3)
    x = jax.random.normal(kx, (batch, obs_size), dtype=jnp.float32)
    params = init_dqn_params(kp, obs_size, n_actions, hidden_size)
    ref = dqn_forward_ref(x, params)

    # --- f32-weight path: bit-accuracy check --------------------------------
    w_f32, b_f32 = pack_dqn_params(params, weight_dtype=jnp.float32)
    out_f32 = jax.block_until_ready(dqn_forward(x, w_f32, b_f32, n_actions))
    assert out_f32.shape == (batch, n_actions)
    assert jnp.allclose(out_f32, ref, atol=1e-5, rtol=1e-5), "f32 mismatch vs reference"

    # --- bf16-weight path (default, perf path on all generations) -----------
    w_bf16, b_bf16 = pack_dqn_params(params)          # bf16 default
    out_bf16 = jax.block_until_ready(dqn_forward(x, w_bf16, b_bf16, n_actions))
    assert out_bf16.shape == (batch, n_actions)
    assert jnp.all(jnp.isfinite(out_bf16))
    assert jnp.allclose(out_bf16, ref, atol=1e-1, rtol=1e-1), "bf16 path diverged"

    # --- larger batch: exercises multi-step grid (both TCs on v7x), batch
    #     padding, and the multi-chunk path -----------------------------------
    B2 = 300
    x2 = jax.random.normal(kx2, (B2, obs_size), dtype=jnp.float32)
    ref2 = dqn_forward_ref(x2, params)
    out2 = jax.block_until_ready(dqn_forward(x2, w_f32, b_f32, n_actions, tile_b=1024))
    assert out2.shape == (B2, n_actions)
    assert jnp.allclose(out2, ref2, atol=1e-4, rtol=1e-4), "large-batch mismatch"

    print("KERNEL_OK")
</pallas_src>

<mosaic_0001>
module attributes {stable_mosaic.version = 11 : i64} {
  func.func @kernel(%arg0: i32, %arg1: memref<2x8xf32, #tpu.memory_space<vmem>>, %arg2: memref<4x128x128xf32, #tpu.memory_space<vmem>>, %arg3: memref<4x1x128xf32, #tpu.memory_space<vmem>>, %arg4: memref<2x128xf32, #tpu.memory_space<vmem>>) attributes {dimension_semantics = [#tpu.dimension_semantics<parallel>], iteration_bounds = array<i64: 1>, scalar_prefetch = 0 : i64, scratch_operands = 0 : i64, tpu.core_type = #tpu.core_type<tc>, window_params = [{transform_indices = @transform_0, window_bounds = array<i64: 2, 8>}, {pipeline_mode = #tpu.pipeline_mode<synchronous>, transform_indices = @transform_1, window_bounds = array<i64: 4, 128, 128>}, {pipeline_mode = #tpu.pipeline_mode<synchronous>, transform_indices = @transform_2, window_bounds = array<i64: 4, 1, 128>}, {transform_indices = @transform_3, window_bounds = array<i64: 2, 128>}]} {
    %c0 = arith.constant 0 : index
    %c0_0 = arith.constant 0 : index
    %0 = vector.load %arg1[%c0, %c0_0] : memref<2x8xf32, #tpu.memory_space<vmem>>, vector<2x8xf32>
    %c0_1 = arith.constant 0 : index
    %c0_2 = arith.constant 0 : index
    %c0_3 = arith.constant 0 : index
    %1 = vector.load %arg2[%c0_1, %c0_2, %c0_3] : memref<4x128x128xf32, #tpu.memory_space<vmem>>, vector<1x8x128xf32>
    %2 = vector.shape_cast %1 : vector<1x8x128xf32> to vector<8x128xf32>
    %cst = arith.constant dense<0.000000e+00> : vector<2x128xf32>
    %3 = tpu.matmul %0, %2, %cst {dimension_numbers = #tpu.dot_dimension_numbers<[1], [0], [0], [1], [0, 0, 1, 1], [], []>} : vector<2x8xf32>, vector<8x128xf32>, vector<2x128xf32> -> vector<2x128xf32>
    %c0_4 = arith.constant 0 : index
    %c0_5 = arith.constant 0 : index
    %c0_6 = arith.constant 0 : index
    %4 = vector.load %arg3[%c0_4, %c0_5, %c0_6] : memref<4x1x128xf32, #tpu.memory_space<vmem>>, vector<1x1x128xf32>
    %5 = vector.shape_cast %4 : vector<1x1x128xf32> to vector<1x128xf32>
    %6 = vector.broadcast %5 : vector<1x128xf32> to vector<2x128xf32>
    %7 = arith.addf %3, %6 : vector<2x128xf32>
    %cst_7 = arith.constant 0.000000e+00 : f32
    %8 = vector.broadcast %cst_7 : f32 to vector<2x128xf32>
    %9 = arith.maximumf %7, %8 : vector<2x128xf32>
    %c1 = arith.constant 1 : index
    %c0_8 = arith.constant 0 : index
    %c0_9 = arith.constant 0 : index
    %10 = vector.load %arg2[%c1, %c0_8, %c0_9] : memref<4x128x128xf32, #tpu.memory_space<vmem>>, vector<1x128x128xf32>
    %11 = vector.shape_cast %10 : vector<1x128x128xf32> to vector<128x128xf32>
    %cst_10 = arith.constant dense<0.000000e+00> : vector<2x128xf32>
    %12 = tpu.matmul %9, %11, %cst_10 {dimension_numbers = #tpu.dot_dimension_numbers<[1], [0], [0], [1], [0, 0, 1, 1], [], []>} : vector<2x128xf32>, vector<128x128xf32>, vector<2x128xf32> -> vector<2x128xf32>
    %c1_11 = arith.constant 1 : index
    %c0_12 = arith.constant 0 : index
    %c0_13 = arith.constant 0 : index
    %13 = vector.load %arg3[%c1_11, %c0_12, %c0_13] : memref<4x1x128xf32, #tpu.memory_space<vmem>>, vector<1x1x128xf32>
    %14 = vector.shape_cast %13 : vector<1x1x128xf32> to vector<1x128xf32>
    %15 = vector.broadcast %14 : vector<1x128xf32> to vector<2x128xf32>
    %16 = arith.addf %12, %15 : vector<2x128xf32>
    %cst_14 = arith.constant 0.000000e+00 : f32
    %17 = vector.broadcast %cst_14 : f32 to vector<2x128xf32>
    %18 = arith.maximumf %16, %17 : vector<2x128xf32>
    %c2 = arith.constant 2 : index
    %c0_15 = arith.constant 0 : index
    %c0_16 = arith.constant 0 : index
    %19 = vector.load %arg2[%c2, %c0_15, %c0_16] : memref<4x128x128xf32, #tpu.memory_space<vmem>>, vector<1x128x128xf32>
    %20 = vector.shape_cast %19 : vector<1x128x128xf32> to vector<128x128xf32>
    %cst_17 = arith.constant dense<0.000000e+00> : vector<2x128xf32>
    %21 = tpu.matmul %18, %20, %cst_17 {dimension_numbers = #tpu.dot_dimension_numbers<[1], [0], [0], [1], [0, 0, 1, 1], [], []>} : vector<2x128xf32>, vector<128x128xf32>, vector<2x128xf32> -> vector<2x128xf32>
    %c2_18 = arith.constant 2 : index
    %c0_19 = arith.constant 0 : index
    %c0_20 = arith.constant 0 : index
    %22 = vector.load %arg3[%c2_18, %c0_19, %c0_20] : memref<4x1x128xf32, #tpu.memory_space<vmem>>, vector<1x1x128xf32>
    %23 = vector.shape_cast %22 : vector<1x1x128xf32> to vector<1x128xf32>
    %24 = vector.broadcast %23 : vector<1x128xf32> to vector<2x128xf32>
    %25 = arith.addf %21, %24 : vector<2x128xf32>
    %cst_21 = arith.constant 0.000000e+00 : f32
    %26 = vector.broadcast %cst_21 : f32 to vector<2x128xf32>
    %27 = arith.maximumf %25, %26 : vector<2x128xf32>
    %c3 = arith.constant 3 : index
    %c0_22 = arith.constant 0 : index
    %c0_23 = arith.constant 0 : index
    %28 = vector.load %arg2[%c3, %c0_22, %c0_23] : memref<4x128x128xf32, #tpu.memory_space<vmem>>, vector<1x128x128xf32>
    %29 = vector.shape_cast %28 : vector<1x128x128xf32> to vector<128x128xf32>
    %cst_24 = arith.constant dense<0.000000e+00> : vector<2x128xf32>
    %30 = tpu.matmul %27, %29, %cst_24 {dimension_numbers = #tpu.dot_dimension_numbers<[1], [0], [0], [1], [0, 0, 1, 1], [], []>} : vector<2x128xf32>, vector<128x128xf32>, vector<2x128xf32> -> vector<2x128xf32>
    %c3_25 = arith.constant 3 : index
    %c0_26 = arith.constant 0 : index
    %c0_27 = arith.constant 0 : index
    %31 = vector.load %arg3[%c3_25, %c0_26, %c0_27] : memref<4x1x128xf32, #tpu.memory_space<vmem>>, vector<1x1x128xf32>
    %32 = vector.shape_cast %31 : vector<1x1x128xf32> to vector<1x128xf32>
    %33 = vector.broadcast %32 : vector<1x128xf32> to vector<2x128xf32>
    %34 = arith.addf %30, %33 : vector<2x128xf32>
    %c0_28 = arith.constant 0 : index
    %c0_29 = arith.constant 0 : index
    %35 = vector.load %arg4[%c0_28, %c0_29] : memref<2x128xf32, #tpu.memory_space<vmem>>, vector<2x128xf32>
    tpu.vector_store %arg4[%c0_28, %c0_29], %34 {strides = array<i32>} : memref<2x128xf32, #tpu.memory_space<vmem>>, vector<2x128xf32>,
    return
  }
  func.func @transform_0(%arg0: i32) -> (i32, i32) {
    %c0_i32 = arith.constant 0 : i32
    %c0_i32_0 = arith.constant 0 : i32
    return %arg0, %c0_i32 : i32, i32
  }
  func.func @transform_1(%arg0: i32) -> (i32, i32, i32) {
    %c0_i32 = arith.constant 0 : i32
    %c0_i32_0 = arith.constant 0 : i32
    %c0_i32_1 = arith.constant 0 : i32
    %c0_i32_2 = arith.constant 0 : i32
    return %c0_i32, %c0_i32_0, %c0_i32_1 : i32, i32, i32
  }
  func.func @transform_2(%arg0: i32) -> (i32, i32, i32) {
    %c0_i32 = arith.constant 0 : i32
    %c0_i32_0 = arith.constant 0 : i32
    %c0_i32_1 = arith.constant 0 : i32
    %c0_i32_2 = arith.constant 0 : i32
    return %c0_i32, %c0_i32_0, %c0_i32_1 : i32, i32, i32
  }
  func.func @transform_3(%arg0: i32) -> (i32, i32) {
    %c0_i32 = arith.constant 0 : i32
    %c0_i32_0 = arith.constant 0 : i32
    return %arg0, %c0_i32 : i32, i32
  }
}

</mosaic_0001>

<bundles_post_ra>
// kernel: tpu_custom_call.1
= control target key start
LH: loop header
LB: loop body
LE: loop exit
PB: predicated region body
PF: predicated region fallthrough
CT: control target
= control target key end

     0   :  { %8 = vsyncpa [#allocation3], 0  ;;  %s868_s0 = inlined_call_operand.hbm [shape: f32[2,8], index: 0, kind: input, shape index: {}]   ;;  %s869_s1 = inlined_call_operand.hbm [shape: f32[4,128,128], index: 1, kind: input, shape index: {}]   ;;  %s870_s2 = inlined_call_operand.vmem [shape: f32[4,1,128], index: 2, kind: input, shape index: {}]   ;;  %s871_s3 = inlined_call_operand.hbm [shape: f32[2,128], index: 3, kind: output, shape index: {}]  }
   0x1   :  { %9 = vsyncpa [#allocation6], 0 }
   0x2   :  { %10 = vsyncpa [#allocation4], 0  ;;  %s752_s12 = smov [#allocation2]   ;;  %s753_s14 = smov [#allocation5]  }
   0x3   :  { %s17_s13 = sshll.u32 %s752_s12, 4  ;;  %s26_s15 = sshll.u32 %s753_s14, 4  ;;  %s18_s13 = int_to_ptr.vmem [resolvable:$true] %s17_s13  ;;  %s780_s15 = int_to_ptr.vmem [resolvable:$true] %s26_s15 }
   0x4   :  { %s680_s18 = scalar_lea.hbm %s868_s0, 32 }
   0x5   :  { %p681_p0 = scmp.ne.s32.totalorder %s868_s0, %s680_s18  ;;  %p684_p1 = scmp.lt.u32.totalorder %s680_s18, %s868_s0 }
   0x7   :  { %p686_p2 = pnand %p684_p1, %p681_p0 }
   0x9   :  { %689 = shalt.err (!%p686_p2)
}
   0xa   :  { %s690_s23 = scalar_lea.vmem %s18_s13, 32  ;;  %p695_p4 = scmp.lt.s32.totalorder %s18_s13, %s18_s13 }
   0xb   :  { %p691_p3 = scmp.ne.s32.totalorder %s18_s13, %s690_s23  ;;  %p696_p5 = scmp.lt.s32.totalorder %s690_s23, %s690_s23 }
   0xd   :  { %p697_p6 = por %p696_p5, %p695_p4 }
   0xf   :  { %p698_p7 = pnand %p697_p6, %p691_p3 }
  0x11   :  { %701 = shalt.err (!%p698_p7)
}
  0x12   :  { %20 = dma.hbm_to_vmem [thread:$0]  %s868_s0, 32, %s18_s13, [#allocation3]  }
  0x13   :  { %s702_s28 = scalar_lea.hbm %s869_s1, 8192 }
  0x14   :  { %p703_p8 = scmp.ne.s32.totalorder %s869_s1, %s702_s28  ;;  %p706_p9 = scmp.lt.u32.totalorder %s702_s28, %s869_s1 }
  0x16   :  { %p708_p10 = pnand %p706_p9, %p703_p8 }
  0x18   :  { %711 = shalt.err (!%p708_p10)
}
  0x19   :  { %s712_s6 = scalar_lea.vmem %s780_s15, 8192  ;;  %p717_p12 = scmp.lt.s32.totalorder %s780_s15, %s780_s15 }
  0x1a   :  { %p713_p11 = scmp.ne.s32.totalorder %s780_s15, %s712_s6  ;;  %p718_p13 = scmp.lt.s32.totalorder %s712_s6, %s712_s6 }
  0x1c   :  { %p719_p0 = por %p718_p13, %p717_p12 }
  0x1e   :  { %p720_p1 = pnand %p719_p0, %p713_p11 }
  0x20   :  { %723 = shalt.err (!%p720_p1)
}
  0x21   :  { %s754_s0 = smov 128   ;;  %s755_s7 = smov 8  }
  0x22   :  { %32 = dma.hbm_to_vmem [thread:$0]  %s869_s1, 8192, %s780_s15, [#allocation6], %s754_s0, %s754_s0, %s755_s7  }
  0x23   :  { %746 = dma.done.wait [#allocation3], 32  }
  0x24   :  { %747 = vsyncadd [#allocation3], 4294967264 }
  0x25   :  { %748 = dma.done.wait [#allocation6], 8192  }
  0x26   :  { %749 = vsyncadd [#allocation6], 4294959104  ;;  %v756_v0 = vmov 0.0   ;;  %vm757_vm0 = vmmov 0   ;;  %v758_v1 = vmov 0.0|0.0   ;;  %vm50_vm1 = vcmask 64512  }
  0x27   :  { %490 = vmatprep.subr.mxu0 %v756_v0  ;;  %492 = vmatprep.mubr.msk.f32.mxu0 %vm757_vm0, %v756_v0  ;;  %v42_v2 = vld [vmem:[#allocation5] sm:$0xff]  ;;  %v41_v3 = vld [vmem:[#allocation2] sm:$0x3]  ;;  %v127_v5 = vld [vmem:[#allocation5 + $0x88] sm:$0xff]  ;;  %s759_s17 = smov [#allocation7]  }
  0x28   :  { %600 = vmatprep.subr.bf16.mxu1 %v758_v1  ;;  %527 = vmatprep.mubr.msk.f32.mxu1 %vm757_vm0, %v756_v0  ;;  %v126_v4 = vld [vmem:[#allocation5 + $0x80] sm:$0xff]  ;;  %v128_v6 = vld [vmem:[#allocation5 + $0x90] sm:$0xff]  ;;  %v129_v7 = vld [vmem:[#allocation5 + $0x98] sm:$0xff]  ;;  %s419_s18 = sshll.u32 %s759_s17, 4  ;;  %s420_s18 = int_to_ptr.vmem [resolvable:$true] %s419_s18 }
  0x29   :  { %491 = vmatpush3.msra.mxu0 %v42_v2  ;;  %v601_v8 = vpack.c.bf16 %v127_v5, %v126_v4  ;;  %v604_v9 = vpack.c.bf16 %v129_v7, %v128_v6  ;;  %v130_v10 = vld [vmem:[#allocation5 + $0xa0] sm:$0xff]  ;;  %v131_v11 = vld [vmem:[#allocation5 + $0xa8] sm:$0xff]  ;;  %v132_v13 = vld [vmem:[#allocation5 + $0xb0] sm:$0xff]  ;;  %s724_s19 = scalar_lea.vmem %s420_s18, 32  ;;  %p729_p3 = scmp.lt.s32.totalorder %s420_s18, %s420_s18 }
  0x2a   :  { %493 = vmatmul.mubr.msk.f32.vlgmr.msra.gmra.mrb[0].mxu0 %vm50_vm1, %v41_v3  ;;  %624 = vmatprep.subr.bf16.mxu0 %v758_v1  ;;  %v607_v12 = vpack.c.bf16 %v131_v11, %v130_v10  ;;  %v133_v14 = vld [vmem:[#allocation5 + $0xb8] sm:$0xff]  ;;  %v134_v16 = vld [vmem:[#allocation5 + $0xc0] sm:$0xff]  ;;  %v135_v17 = vld [vmem:[#allocation5 + $0xc8] sm:$0xff]  ;;  %p725_p2 = scmp.ne.s32.totalorder %s420_s18, %s724_s19  ;;  %p730_p4 = scmp.lt.s32.totalorder %s724_s19, %s724_s19 }
  0x2b   :  { %562 = vmatprep.mubr.msk.f32.mxu0 %vm757_vm0, %v756_v0  ;;  %602 = vmatpush3.bf16.msra.mxu1 %v601_v8  ;;  %v610_v15 = vpack.c.bf16 %v133_v14, %v132_v13  ;;  %v613_v18 = vpack.c.bf16 %v135_v17, %v134_v16  ;;  %v136_v19 = vld [vmem:[#allocation5 + $0xd0] sm:$0xff]  ;;  %v137_v20 = vld [vmem:[#allocation5 + $0xd8] sm:$0xff]  ;;  %v138_v22 = vld [vmem:[#allocation5 + $0xe0] sm:$0xff] }
  0x2c   :  { %603 = vmatprep.subr.bf16.mxu1 %v758_v1  ;;  %v616_v21 = vpack.c.bf16 %v137_v20, %v136_v19  ;;  %v139_v23 = vld [vmem:[#allocation5 + $0xe8] sm:$0xff]  ;;  %v140_v25 = vld [vmem:[#allocation5 + $0xf0] sm:$0xff]  ;;  %v141_v26 = vld [vmem:[#allocation5 + $0xf8] sm:$0xff]  ;;  %p731_p5 = por %p730_p4, %p729_p3 }
  0x2d   :  { %v619_v24 = vpack.c.bf16 %v139_v23, %v138_v22  ;;  %v622_v27 = vpack.c.bf16 %v141_v26, %v140_v25  ;;  %v222_v28 = vld [vmem:[#allocation5 + $0x100] sm:$0xff]  ;;  %v223_v29 = vld [vmem:[#allocation5 + $0x108] sm:$0xff]  ;;  %v224_v30 = vld [vmem:[#allocation5 + $0x110] sm:$0xff] }
  0x2e   :  { %v625_v31 = vpack.c.bf16 %v223_v29, %v222_v28  ;;  %v225_v32 = vld [vmem:[#allocation5 + $0x118] sm:$0xff]  ;;  %v226_v34 = vld [vmem:[#allocation5 + $0x120] sm:$0xff]  ;;  %v227_v35 = vld [vmem:[#allocation5 + $0x128] sm:$0xff]  ;;  %p732_p6 = pnand %p731_p5, %p725_p2 }
  0x2f   :  { %605 = vmatpush3.bf16.msra.mxu1 %v604_v9  ;;  %v628_v33 = vpack.c.bf16 %v225_v32, %v224_v30  ;;  %v631_v36 = vpack.c.bf16 %v227_v35, %v226_v34  ;;  %v228_v37 = vld [vmem:[#allocation5 + $0x130] sm:$0xff]  ;;  %v229_v38 = vld [vmem:[#allocation5 + $0x138] sm:$0xff]  ;;  %v230_v40 = vld [vmem:[#allocation5 + $0x140] sm:$0xff] }
  0x30   :  { %606 = vmatprep.subr.bf16.mxu1 %v758_v1  ;;  %626 = vmatpush3.bf16.msra.mxu0 %v625_v31  ;;  %v634_v39 = vpack.c.bf16 %v229_v38, %v228_v37  ;;  %v231_v41 = vld [vmem:[#allocation5 + $0x148] sm:$0xff]  ;;  %v232_v43 = vld [vmem:[#allocation5 + $0x150] sm:$0xff]  ;;  %v233_v44 = vld [vmem:[#allocation5 + $0x158] sm:$0xff] }
  0x31   :  { %627 = vmatprep.subr.bf16.mxu0 %v758_v1  ;;  %v637_v42 = vpack.c.bf16 %v231_v41, %v230_v40  ;;  %v640_v45 = vpack.c.bf16 %v233_v44, %v232_v43  ;;  %v234_v46 = vld [vmem:[#allocation5 + $0x160] sm:$0xff]  ;;  %v235_v47 = vld [vmem:[#allocation5 + $0x168] sm:$0xff]  ;;  %v429_v49 = vld [vmem:[%s870_s2] ss:$0 sm:$0xff] }
  0x32   :  { %v643_v48 = vpack.c.bf16 %v235_v47, %v234_v46  ;;  %v236_v54 = vld [vmem:[#allocation5 + $0x170] sm:$0xff]  ;;  %v237_v55 = vld [vmem:[#allocation5 + $0x178] sm:$0xff]  ;;  %v318_v57 = vld [vmem:[#allocation5 + $0x180] sm:$0xff] }
  0x33   :  { %608 = vmatpush3.bf16.msra.mxu1 %v607_v12  ;;  %v646_v56 = vpack.c.bf16 %v237_v55, %v236_v54  ;;  %v319_v58 = vld [vmem:[#allocation5 + $0x188] sm:$0xff]  ;;  %v320_v59 = vld [vmem:[#allocation5 + $0x190] sm:$0xff]  ;;  %v321_v61 = vld [vmem:[#allocation5 + $0x198] sm:$0xff] }
  0x34   :  { %609 = vmatprep.subr.bf16.mxu1 %v758_v1  ;;  %629 = vmatpush3.bf16.msra.mxu0 %v628_v33  ;;  %v649_v60 = vpack.c.bf16 %v319_v58, %v318_v57  ;;  %v652_v62 = vpack.c.bf16 %v321_v61, %v320_v59  ;;  %v322_v63 = vld [vmem:[#allocation5 + $0x1a0] sm:$0xff]  ;;  %v323_v2 = vld [vmem:[#allocation5 + $0x1a8] sm:$0xff]  ;;  %v325_v4 = vld [vmem:[#allocation5 + $0x1b8] sm:$0xff] }
  0x35   :  { %630 = vmatprep.subr.bf16.mxu0 %v758_v1  ;;  %v655_v3 = vpack.c.bf16 %v323_v2, %v322_v63  ;;  %v326_v6 = vld [vmem:[#allocation5 + $0x1c0] sm:$0xff]  ;;  %v327_v7 = vld [vmem:[#allocation5 + $0x1c8] sm:$0xff]  ;;  %v328_v9 = vld [vmem:[#allocation5 + $0x1d0] sm:$0xff] }
  0x36   :  { %v661_v8 = vpack.c.bf16 %v327_v7, %v326_v6  ;;  %v329_v10 = vld [vmem:[#allocation5 + $0x1d8] sm:$0xff]  ;;  %v330_v12 = vld [vmem:[#allocation5 + $0x1e0] sm:$0xff]  ;;  %v331_v13 = vld [vmem:[#allocation5 + $0x1e8] sm:$0xff] }
  0x37   :  { %611 = vmatpush3.bf16.msra.mxu1 %v610_v15  ;;  %v664_v11 = vpack.c.bf16 %v329_v10, %v328_v9  ;;  %v667_v14 = vpack.c.bf16 %v331_v13, %v330_v12  ;;  %v432_v15 = vld [vmem:[%s870_s2 + $0x1] ss:$0 sm:$0xff]  ;;  %v434_v23 = vld [vmem:[%s870_s2 + $0x2] ss:$0 sm:$0xff] }
  0x38   :  { %612 = vmatprep.subr.bf16.mxu1 %v758_v1  ;;  %632 = vmatpush3.bf16.msra.mxu0 %v631_v36  ;;  %v332_v20 = vld [vmem:[#allocation5 + $0x1f0] sm:$0xff] }
  0x39   :  { %633 = vmatprep.subr.bf16.mxu0 %v758_v1 }
  0x3b   :  { %614 = vmatpush3.bf16.msra.mxu1 %v613_v18 }
  0x3c   :  { %615 = vmatprep.subr.bf16.mxu1 %v758_v1  ;;  %635 = vmatpush3.bf16.msra.mxu0 %v634_v39 }
  0x3d   :  { %636 = vmatprep.subr.bf16.mxu0 %v758_v1 }
  0x3f   :  { %617 = vmatpush3.bf16.msra.mxu1 %v616_v21  ;;  %v333_v21 = vld [vmem:[#allocation5 + $0x1f8] sm:$0xff] }
  0x40   :  { %618 = vmatprep.subr.bf16.mxu1 %v758_v1  ;;  %638 = vmatpush3.bf16.msra.mxu0 %v637_v42  ;;  %v670_v22 = vpack.c.bf16 %v333_v21, %v332_v20 }
  0x41   :  { %639 = vmatprep.subr.bf16.mxu0 %v758_v1 }
  0x43   :  { %620 = vmatpush3.bf16.msra.mxu1 %v619_v24 }
  0x44   :  { %621 = vmatprep.subr.bf16.mxu1 %v758_v1  ;;  %641 = vmatpush3.bf16.msra.mxu0 %v640_v45 }
  0x45   :  { %642 = vmatprep.subr.bf16.mxu0 %v758_v1 }
  0x47   :  { %623 = vmatpush3.bf16.msra.mxu1 %v622_v27  ;;  %v436_v27 = vld [vmem:[%s870_s2 + $0x3] ss:$0 sm:$0xff] }
  0x48   :  { %648 = vmatprep.subr.bf16.mxu1 %v758_v1  ;;  %644 = vmatpush3.bf16.msra.mxu0 %v643_v48 }
  0x49   :  { %645 = vmatprep.subr.bf16.mxu0 %v758_v1 }
  0x4c   :  { %647 = vmatpush3.bf16.msra.mxu0 %v646_v56 }
  0xfd   :  { %v120_v50 = vpop.f32.mrb[0].mxu0 }
  0xfe   :  { %v121_v51 = vadd.f32 %v429_v49, %v120_v50  ;;  %v494_v52 = vpop.f32.mrb[1].mxu0 }
 0x100   :  { %v124_v53 = vmax.f32 %v121_v51, 0.0 }
 0x102   :  { %528 = vmatmul.mubr.f32.vlgmr.msra.gmra.mrb[0].mxu1 %v124_v53 }
 0x103   :  { %597 = vmatprep.mubr.msk.f32.mxu1 %vm757_vm0, %v756_v0  ;;  %650 = vmatpush3.bf16.msra.mxu1 %v649_v60  ;;  %v324_v0 = vld [vmem:[#allocation5 + $0x1b0] sm:$0xff] }
 0x104   :  { %651 = vmatprep.subr.bf16.mxu1 %v758_v1  ;;  %v658_v5 = vpack.c.bf16 %v325_v4, %v324_v0 }
 0x107   :  { %653 = vmatpush3.bf16.msra.mxu1 %v652_v62 }
 0x108   :  { %654 = vmatprep.subr.bf16.mxu1 %v758_v1 }
 0x10b   :  { %656 = vmatpush3.bf16.msra.mxu1 %v655_v3 }
 0x10c   :  { %657 = vmatprep.subr.bf16.mxu1 %v758_v1 }
 0x10f   :  { %659 = vmatpush3.bf16.msra.mxu1 %v658_v5 }
 0x110   :  { %660 = vmatprep.subr.bf16.mxu1 %v758_v1 }
 0x113   :  { %662 = vmatpush3.bf16.msra.mxu1 %v661_v8 }
 0x114   :  { %663 = vmatprep.subr.bf16.mxu1 %v758_v1 }
 0x117   :  { %665 = vmatpush3.bf16.msra.mxu1 %v664_v11 }
 0x118   :  { %666 = vmatprep.subr.bf16.mxu1 %v758_v1 }
 0x11b   :  { %668 = vmatpush3.bf16.msra.mxu1 %v667_v14 }
 0x11c   :  { %669 = vmatprep.subr.bf16.mxu1 %v758_v1 }
 0x11f   :  { %671 = vmatpush3.bf16.msra.mxu1 %v670_v22 }
 0x1d5   :  { %v216_v16 = vpop.f32.mrb[0].mxu1 }
 0x1d6   :  { %v217_v17 = vadd.f32 %v432_v15, %v216_v16  ;;  %v529_v18 = vpop.f32.mrb[1].mxu1 }
 0x1d8   :  { %v220_v19 = vmax.f32 %v217_v17, 0.0 }
 0x1da   :  { %563 = vmatmul.mubr.f32.vlgmr.msra.gmra.mrb[2].mxu0 %v220_v19 }
 0x2ad   :  { %v312_v24 = vpop.f32.mrb[2].mxu0 }
 0x2ae   :  { %v313_v25 = vadd.f32 %v434_v23, %v312_v24  ;;  %v564_v1 = vpop.f32.mrb[3].mxu0 }
 0x2b0   :  { %v316_v26 = vmax.f32 %v313_v25, 0.0 }
 0x2b2   :  { %598 = vmatmul.mubr.f32.vlgmr.msra.gmra.mrb[2].mxu1 %v316_v26 }
 0x385   :  { %v408_v28 = vpop.f32.mrb[2].mxu1 }
 0x386   :  { %v409_v29 = vadd.f32 %v436_v27, %v408_v28  ;;  %v599_v30 = vpop.f32.mrb[3].mxu1 }
 0x388   :  { %412 = vst [vmem:[#allocation7] sm:$0x3] %v409_v29 }
 0x389   :  { %735 = shalt.err (!%p732_p6)
}
 0x38a   :  { %s736_s22 = scalar_lea.hbm %s871_s3, 32 }
 0x38b   :  { %p737_p7 = scmp.ne.s32.totalorder %s871_s3, %s736_s22  ;;  %p740_p8 = scmp.lt.u32.totalorder %s736_s22, %s871_s3 }
 0x38d   :  { %p742_p9 = pnand %p740_p8, %p737_p7 }
 0x38f   :  { %745 = shalt.err (!%p742_p9)
}
 0x390   :  { %422 = dma.vmem_to_hbm [thread:$0]  %s420_s18, 32, %s871_s3, [#allocation4]  }
 0x391   :  { %750 = dma.done.wait [#allocation4], 32  }
 0x392   :  { %751 = vsyncadd [#allocation4], 4294967264 }
 0x393   :  { %426 = vsyncpa [#allocation3], 1 }
 0x394   :  { %427 = vsyncpa [#allocation6], 1 }
 0x395   :  { %428 = vsyncpa [#allocation4], 1 }

</bundles_post_ra>
